<compile_context>
chip_gen: v7x
topology: tpu7x:2x2x1
jax: 0.10.0
libtpu: 0.0.40
codegen_flags: <defaults>
</compile_context>

<pallas_src>
import math

import jax
import jax.numpy as jnp
import numpy as np
from jax import lax
from jax.experimental import pallas as pl
from jax.experimental.pallas import tpu as pltpu


def _make_bilstm_kernel(B: int, S: int, Hd: int):
    """Kernel closure. Hd = hidden size per direction; gate lanes = 8*Hd."""

    def kernel(xc_ref, wih_ref, whh_ref, b_ref, out_ref, hn_ref, cn_ref):
        # Fused input projection for all time steps, both directions, all gates:
        # (S*B, 2*D) @ (2*D, 8*Hd) -> (S*B, 8*Hd).  Bias (b_ih + b_hh) added once.
        xw = jnp.dot(xc_ref[...], wih_ref[...],
                     preferred_element_type=jnp.float32) + b_ref[...]

        whh = whh_ref[...]                        # (2*Hd, 8*Hd) block-diagonal
        h = jnp.zeros((B, 2 * Hd), jnp.float32)   # [h_fwd | h_rev]
        c = jnp.zeros((B, 2 * Hd), jnp.float32)   # [c_fwd | c_rev]

        # Sequential recurrence (inherent to an LSTM).  S is static and small,
        # so the fully-unrolled loop keeps every slice static.
        # TODO(synk): for long sequences switch to lax.fori_loop with pl.ds +
        #             pl.multiple_of instead of full unrolling.
        for t in range(S):
            gx = xw[t * B:(t + 1) * B, :]                    # (B, 8*Hd)
            gates = gx + jnp.dot(h, whh,
                                 preferred_element_type=jnp.float32)
            i = jax.nn.sigmoid(gates[:, 0 * 2 * Hd:1 * 2 * Hd])
            f = jax.nn.sigmoid(gates[:, 1 * 2 * Hd:2 * 2 * Hd])
            g = jnp.tanh(gates[:, 2 * 2 * Hd:3 * 2 * Hd])
            o = jax.nn.sigmoid(gates[:, 3 * 2 * Hd:4 * 2 * Hd])
            c = f * c + i * g
            h = o * jnp.tanh(c)
            # One full-width store per step.  The reverse half is in "loop
            # time" (original time S-1-t) and is un-flipped by the wrapper.
            out_ref[t * B:(t + 1) * B, :] = h

        hn_ref[...] = h
        cn_ref[...] = c

    return kernel


def bilstm_pallas(x, params, hidden_dim: int):
    """x: (B, S, D) float32.  params in PyTorch nn.LSTM layout (gate order
    i,f,g,o).  Returns (output (B,S,hidden_dim), (h_n (2,B,Hd), c_n (2,B,Hd)))."""
    B, S, D = x.shape
    Hd = hidden_dim // 2

    def gate_interleave_blockdiag(wf_T, wr_T, rows_f, rows_r):
        # wf_T: (rows_f, 4*Hd), wr_T: (rows_r, 4*Hd); torch gate order i,f,g,o.
        # Returns block-diagonal (rows_f + rows_r, 8*Hd) with column order
        # [i_f, i_r, f_f, f_r, g_f, g_r, o_f, o_r] (each Hd wide).
        top, bot = [], []
        zf = jnp.zeros((rows_f, Hd), jnp.float32)
        zr = jnp.zeros((rows_r, Hd), jnp.float32)
        for gi in range(4):
            top += [wf_T[:, gi * Hd:(gi + 1) * Hd], zf]
            bot += [zr, wr_T[:, gi * Hd:(gi + 1) * Hd]]
        return jnp.concatenate(
            [jnp.concatenate(top, axis=1), jnp.concatenate(bot, axis=1)], axis=0)

    w_ih_comb = gate_interleave_blockdiag(
        params["w_ih_f"].T.astype(jnp.float32),
        params["w_ih_r"].T.astype(jnp.float32), D, D)            # (2D, 8Hd)
    w_hh_comb = gate_interleave_blockdiag(
        params["w_hh_f"].T.astype(jnp.float32),
        params["w_hh_r"].T.astype(jnp.float32), Hd, Hd)          # (2Hd, 8Hd)

    b_f = params["b_ih_f"] + params["b_hh_f"]                    # (4Hd,)
    b_r = params["b_ih_r"] + params["b_hh_r"]
    b_comb = jnp.concatenate(
        [jnp.concatenate([b_f[gi * Hd:(gi + 1) * Hd],
                          b_r[gi * Hd:(gi + 1) * Hd]]) for gi in range(4)]
    ).reshape(1, 8 * Hd).astype(jnp.float32)

    # (S*B, 2D): first D lanes = x_t (forward), last D lanes = x_{S-1-t} (reverse).
    x_tb = jnp.transpose(x.astype(jnp.float32), (1, 0, 2))       # (S, B, D)
    x_comb = jnp.concatenate([x_tb, x_tb[::-1]], axis=-1).reshape(S * B, 2 * D)

    kernel = _make_bilstm_kernel(B, S, Hd)
    full = lambda i: (0, 0)

    out_sb, hn_packed, cn_packed = pl.pallas_call(
        kernel,
        out_shape=(
            jax.ShapeDtypeStruct((S * B, 2 * Hd), jnp.float32),  # h per step
            jax.ShapeDtypeStruct((B, 2 * Hd), jnp.float32),      # final h packed
            jax.ShapeDtypeStruct((B, 2 * Hd), jnp.float32),      # final c packed
        ),
        grid_spec=pltpu.PrefetchScalarGridSpec(
            num_scalar_prefetch=0,
            grid=(1,),
            in_specs=[
                pl.BlockSpec((S * B, 2 * D), full),      # packed inputs
                pl.BlockSpec((2 * D, 8 * Hd), full),     # fused W_ih (block-diag)
                pl.BlockSpec((2 * Hd, 8 * Hd), full),    # fused W_hh (block-diag)
                pl.BlockSpec((1, 8 * Hd), full),         # fused bias
            ],
            out_specs=(
                pl.BlockSpec((S * B, 2 * Hd), full),
                pl.BlockSpec((B, 2 * Hd), full),
                pl.BlockSpec((B, 2 * Hd), full),
            ),
        ),
        compiler_params=pltpu.CompilerParams(
            dimension_semantics=("arbitrary",)),
    )(x_comb, w_ih_comb, w_hh_comb, b_comb)

    out_sb = out_sb.reshape(S, B, 2 * Hd)
    fwd = out_sb[:, :, :Hd]           # forward outputs already in original time
    bwd = out_sb[::-1, :, Hd:]        # reverse outputs: flip loop-time -> time
    output = jnp.concatenate([fwd, bwd], axis=-1).transpose(1, 0, 2)  # (B,S,2Hd)

    h_n = jnp.stack([hn_packed[:, :Hd], hn_packed[:, Hd:]], axis=0)   # (2,B,Hd)
    c_n = jnp.stack([cn_packed[:, :Hd], cn_packed[:, Hd:]], axis=0)
    return output, (h_n, c_n)


def _reference(x, params, hidden_dim):
    """Pure-JAX reference mirroring PyTorch nn.LSTM (bidirectional, zero init)."""
    B, S, D = x.shape
    Hd = hidden_dim // 2

    def run_dir(x_seq, w_ih, w_hh, b_ih, b_hh):
        def step(carry, x_t):
            h, c = carry
            gates = x_t @ w_ih.T + b_ih + h @ w_hh.T + b_hh
            i, f, g, o = jnp.split(gates, 4, axis=-1)
            i = jax.nn.sigmoid(i)
            f = jax.nn.sigmoid(f)
            g = jnp.tanh(g)
            o = jax.nn.sigmoid(o)
            c = f * c + i * g
            h = o * jnp.tanh(c)
            return (h, c), h
        h0 = jnp.zeros((B, Hd), jnp.float32)
        (h_last, c_last), hs = lax.scan(step, (h0, h0), x_seq)
        return hs, h_last, c_last

    x_sb = jnp.transpose(x, (1, 0, 2))                    # (S, B, D)
    hs_f, hT_f, cT_f = run_dir(x_sb, params["w_ih_f"], params["w_hh_f"],
                               params["b_ih_f"], params["b_hh_f"])
    hs_r, hT_r, cT_r = run_dir(x_sb[::-1], params["w_ih_r"], params["w_hh_r"],
                               params["b_ih_r"], params["b_hh_r"])
    hs_r = hs_r[::-1]                                     # back to original time
    output = jnp.concatenate([hs_f, hs_r], axis=-1).transpose(1, 0, 2)
    h_n = jnp.stack([hT_f, hT_r], axis=0)
    c_n = jnp.stack([cT_f, cT_r], axis=0)
    return output, (h_n, c_n)


if __name__ == "__main__":
    # Small shapes consistent with the module: input_dim=32, hidden_dim=32
    # (=> 16 per direction), batch=2, seq=8.
    B, S, D, HIDDEN = 2, 8, 32, 32
    Hd = HIDDEN // 2

    key = jax.random.PRNGKey(0)
    keys = jax.random.split(key, 9)
    x = jax.random.normal(keys[0], (B, S, D), dtype=jnp.float32)

    k = 1.0 / math.sqrt(Hd)   # PyTorch nn.LSTM default uniform init range
    u = lambda kk, shape: jax.random.uniform(kk, shape, jnp.float32, -k, k)
    params = {
        "w_ih_f": u(keys[1], (4 * Hd, D)),
        "w_hh_f": u(keys[2], (4 * Hd, Hd)),
        "b_ih_f": u(keys[3], (4 * Hd,)),
        "b_hh_f": u(keys[4], (4 * Hd,)),
        "w_ih_r": u(keys[5], (4 * Hd, D)),
        "w_hh_r": u(keys[6], (4 * Hd, Hd)),
        "b_ih_r": u(keys[7], (4 * Hd,)),
        "b_hh_r": u(keys[8], (4 * Hd,)),
    }

    out, (h_n, c_n) = bilstm_pallas(x, params, HIDDEN)
    out, h_n, c_n = jax.block_until_ready((out, h_n, c_n))

    ref_out, (ref_hn, ref_cn) = _reference(x, params, HIDDEN)
    np.testing.assert_allclose(np.asarray(out), np.asarray(ref_out),
                               rtol=1e-4, atol=1e-4)
    np.testing.assert_allclose(np.asarray(h_n), np.asarray(ref_hn),
                               rtol=1e-4, atol=1e-4)
    np.testing.assert_allclose(np.asarray(c_n), np.asarray(ref_cn),
                               rtol=1e-4, atol=1e-4)

    print("KERNEL_OK")
</pallas_src>

<mosaic_0001>
module attributes {stable_mosaic.version = 11 : i64} {
  func.func @kernel(%arg0: i32, %arg1: memref<16x64xf32, #tpu.memory_space<vmem>>, %arg2: memref<64x128xf32, #tpu.memory_space<vmem>>, %arg3: memref<32x128xf32, #tpu.memory_space<vmem>>, %arg4: memref<1x128xf32, #tpu.memory_space<vmem>>, %arg5: memref<16x32xf32, #tpu.memory_space<vmem>>, %arg6: memref<2x32xf32, #tpu.memory_space<vmem>>, %arg7: memref<2x32xf32, #tpu.memory_space<vmem>>) attributes {dimension_semantics = [#tpu.dimension_semantics<arbitrary>], iteration_bounds = array<i64: 1>, scalar_prefetch = 0 : i64, scratch_operands = 0 : i64, tpu.core_type = #tpu.core_type<tc>, window_params = [{pipeline_mode = #tpu.pipeline_mode<synchronous>, transform_indices = @transform_0, window_bounds = array<i64: 16, 64>}, {pipeline_mode = #tpu.pipeline_mode<synchronous>, transform_indices = @transform_1, window_bounds = array<i64: 64, 128>}, {pipeline_mode = #tpu.pipeline_mode<synchronous>, transform_indices = @transform_2, window_bounds = array<i64: 32, 128>}, {pipeline_mode = #tpu.pipeline_mode<synchronous>, transform_indices = @transform_3, window_bounds = array<i64: 1, 128>}, {pipeline_mode = #tpu.pipeline_mode<synchronous>, transform_indices = @transform_4, window_bounds = array<i64: 16, 32>}, {pipeline_mode = #tpu.pipeline_mode<synchronous>, transform_indices = @transform_5, window_bounds = array<i64: 2, 32>}, {pipeline_mode = #tpu.pipeline_mode<synchronous>, transform_indices = @transform_6, window_bounds = array<i64: 2, 32>}]} {
    %c0 = arith.constant 0 : index
    %c0_0 = arith.constant 0 : index
    %0 = vector.load %arg1[%c0, %c0_0] : memref<16x64xf32, #tpu.memory_space<vmem>>, vector<16x64xf32>
    %c0_1 = arith.constant 0 : index
    %c0_2 = arith.constant 0 : index
    %1 = vector.load %arg2[%c0_1, %c0_2] : memref<64x128xf32, #tpu.memory_space<vmem>>, vector<64x128xf32>
    %cst = arith.constant dense<0.000000e+00> : vector<16x128xf32>
    %2 = tpu.matmul %0, %1, %cst {dimension_numbers = #tpu.dot_dimension_numbers<[1], [0], [0], [1], [0, 0, 1, 1], [], []>} : vector<16x64xf32>, vector<64x128xf32>, vector<16x128xf32> -> vector<16x128xf32>
    %c0_3 = arith.constant 0 : index
    %c0_4 = arith.constant 0 : index
    %3 = vector.load %arg4[%c0_3, %c0_4] : memref<1x128xf32, #tpu.memory_space<vmem>>, vector<1x128xf32>
    %4 = vector.broadcast %3 : vector<1x128xf32> to vector<16x128xf32>
    %5 = arith.addf %2, %4 : vector<16x128xf32>
    %c0_5 = arith.constant 0 : index
    %c0_6 = arith.constant 0 : index
    %6 = vector.load %arg3[%c0_5, %c0_6] : memref<32x128xf32, #tpu.memory_space<vmem>>, vector<32x128xf32>
    %cst_7 = arith.constant 0.000000e+00 : f32
    %7 = vector.broadcast %cst_7 : f32 to vector<2x32xf32>
    %cst_8 = arith.constant 0.000000e+00 : f32
    %8 = vector.broadcast %cst_8 : f32 to vector<2x32xf32>
    %9 = vector.extract_strided_slice %5 {offsets = [0, 0], sizes = [2, 128], strides = [1, 1]} : vector<16x128xf32> to vector<2x128xf32>
    %cst_9 = arith.constant dense<0.000000e+00> : vector<2x128xf32>
    %10 = tpu.matmul %7, %6, %cst_9 {dimension_numbers = #tpu.dot_dimension_numbers<[1], [0], [0], [1], [0, 0, 1, 1], [], []>} : vector<2x32xf32>, vector<32x128xf32>, vector<2x128xf32> -> vector<2x128xf32>
    %11 = arith.addf %9, %10 : vector<2x128xf32>
    %12 = vector.extract_strided_slice %11 {offsets = [0, 0], sizes = [2, 32], strides = [1, 1]} : vector<2x128xf32> to vector<2x32xf32>
    %13 = arith.negf %12 : vector<2x32xf32>
    %14 = math.exp %13 : vector<2x32xf32>
    %cst_10 = arith.constant 1.000000e+00 : f32
    %15 = vector.broadcast %cst_10 : f32 to vector<2x32xf32>
    %16 = arith.addf %15, %14 : vector<2x32xf32>
    %17 = arith.divf %15, %16 : vector<2x32xf32>
    %18 = vector.extract_strided_slice %11 {offsets = [0, 32], sizes = [2, 32], strides = [1, 1]} : vector<2x128xf32> to vector<2x32xf32>
    %19 = arith.negf %18 : vector<2x32xf32>
    %20 = math.exp %19 : vector<2x32xf32>
    %cst_11 = arith.constant 1.000000e+00 : f32
    %21 = vector.broadcast %cst_11 : f32 to vector<2x32xf32>
    %22 = arith.addf %21, %20 : vector<2x32xf32>
    %23 = arith.divf %21, %22 : vector<2x32xf32>
    %24 = vector.extract_strided_slice %11 {offsets = [0, 64], sizes = [2, 32], strides = [1, 1]} : vector<2x128xf32> to vector<2x32xf32>
    %25 = math.tanh %24 : vector<2x32xf32>
    %26 = vector.extract_strided_slice %11 {offsets = [0, 96], sizes = [2, 32], strides = [1, 1]} : vector<2x128xf32> to vector<2x32xf32>
    %27 = arith.negf %26 : vector<2x32xf32>
    %28 = math.exp %27 : vector<2x32xf32>
    %cst_12 = arith.constant 1.000000e+00 : f32
    %29 = vector.broadcast %cst_12 : f32 to vector<2x32xf32>
    %30 = arith.addf %29, %28 : vector<2x32xf32>
    %31 = arith.divf %29, %30 : vector<2x32xf32>
    %32 = arith.mulf %23, %8 : vector<2x32xf32>
    %33 = arith.mulf %17, %25 : vector<2x32xf32>
    %34 = arith.addf %32, %33 : vector<2x32xf32>
    %35 = math.tanh %34 : vector<2x32xf32>
    %36 = arith.mulf %31, %35 : vector<2x32xf32>
    %c0_13 = arith.constant 0 : index
    %c0_14 = arith.constant 0 : index
    %37 = vector.load %arg5[%c0_13, %c0_14] : memref<16x32xf32, #tpu.memory_space<vmem>>, vector<2x32xf32>
    tpu.vector_store %arg5[%c0_13, %c0_14], %36 {strides = array<i32>} : memref<16x32xf32, #tpu.memory_space<vmem>>, vector<2x32xf32>,
    %38 = vector.extract_strided_slice %5 {offsets = [2, 0], sizes = [2, 128], strides = [1, 1]} : vector<16x128xf32> to vector<2x128xf32>
    %cst_15 = arith.constant dense<0.000000e+00> : vector<2x128xf32>
    %39 = tpu.matmul %36, %6, %cst_15 {dimension_numbers = #tpu.dot_dimension_numbers<[1], [0], [0], [1], [0, 0, 1, 1], [], []>} : vector<2x32xf32>, vector<32x128xf32>, vector<2x128xf32> -> vector<2x128xf32>
    %40 = arith.addf %38, %39 : vector<2x128xf32>
    %41 = vector.extract_strided_slice %40 {offsets = [0, 0], sizes = [2, 32], strides = [1, 1]} : vector<2x128xf32> to vector<2x32xf32>
    %42 = arith.negf %41 : vector<2x32xf32>
    %43 = math.exp %42 : vector<2x32xf32>
    %cst_16 = arith.constant 1.000000e+00 : f32
    %44 = vector.broadcast %cst_16 : f32 to vector<2x32xf32>
    %45 = arith.addf %44, %43 : vector<2x32xf32>
    %46 = arith.divf %44, %45 : vector<2x32xf32>
    %47 = vector.extract_strided_slice %40 {offsets = [0, 32], sizes = [2, 32], strides = [1, 1]} : vector<2x128xf32> to vector<2x32xf32>
    %48 = arith.negf %47 : vector<2x32xf32>
    %49 = math.exp %48 : vector<2x32xf32>
    %cst_17 = arith.constant 1.000000e+00 : f32
    %50 = vector.broadcast %cst_17 : f32 to vector<2x32xf32>
    %51 = arith.addf %50, %49 : vector<2x32xf32>
    %52 = arith.divf %50, %51 : vector<2x32xf32>
    %53 = vector.extract_strided_slice %40 {offsets = [0, 64], sizes = [2, 32], strides = [1, 1]} : vector<2x128xf32> to vector<2x32xf32>
    %54 = math.tanh %53 : vector<2x32xf32>
    %55 = vector.extract_strided_slice %40 {offsets = [0, 96], sizes = [2, 32], strides = [1, 1]} : vector<2x128xf32> to vector<2x32xf32>
    %56 = arith.negf %55 : vector<2x32xf32>
    %57 = math.exp %56 : vector<2x32xf32>
    %cst_18 = arith.constant 1.000000e+00 : f32
    %58 = vector.broadcast %cst_18 : f32 to vector<2x32xf32>
    %59 = arith.addf %58, %57 : vector<2x32xf32>
    %60 = arith.divf %58, %59 : vector<2x32xf32>
    %61 = arith.mulf %52, %34 : vector<2x32xf32>
    %62 = arith.mulf %46, %54 : vector<2x32xf32>
    %63 = arith.addf %61, %62 : vector<2x32xf32>
    %64 = math.tanh %63 : vector<2x32xf32>
    %65 = arith.mulf %60, %64 : vector<2x32xf32>
    %c2 = arith.constant 2 : index
    %c0_19 = arith.constant 0 : index
    %66 = vector.load %arg5[%c2, %c0_19] : memref<16x32xf32, #tpu.memory_space<vmem>>, vector<2x32xf32>
    tpu.vector_store %arg5[%c2, %c0_19], %65 {strides = array<i32>} : memref<16x32xf32, #tpu.memory_space<vmem>>, vector<2x32xf32>,
    %67 = vector.extract_strided_slice %5 {offsets = [4, 0], sizes = [2, 128], strides = [1, 1]} : vector<16x128xf32> to vector<2x128xf32>
    %cst_20 = arith.constant dense<0.000000e+00> : vector<2x128xf32>
    %68 = tpu.matmul %65, %6, %cst_20 {dimension_numbers = #tpu.dot_dimension_numbers<[1], [0], [0], [1], [0, 0, 1, 1], [], []>} : vector<2x32xf32>, vector<32x128xf32>, vector<2x128xf32> -> vector<2x128xf32>
    %69 = arith.addf %67, %68 : vector<2x128xf32>
    %70 = vector.extract_strided_slice %69 {offsets = [0, 0], sizes = [2, 32], strides = [1, 1]} : vector<2x128xf32> to vector<2x32xf32>
    %71 = arith.negf %70 : vector<2x32xf32>
    %72 = math.exp %71 : vector<2x32xf32>
    %cst_21 = arith.constant 1.000000e+00 : f32
    %73 = vector.broadcast %cst_21 : f32 to vector<2x32xf32>
    %74 = arith.addf %73, %72 : vector<2x32xf32>
    %75 = arith.divf %73, %74 : vector<2x32xf32>
    %76 = vector.extract_strided_slice %69 {offsets = [0, 32], sizes = [2, 32], strides = [1, 1]} : vector<2x128xf32> to vector<2x32xf32>
    %77 = arith.negf %76 : vector<2x32xf32>
    %78 = math.exp %77 : vector<2x32xf32>
    %cst_22 = arith.constant 1.000000e+00 : f32
    %79 = vector.broadcast %cst_22 : f32 to vector<2x32xf32>
    %80 = arith.addf %79, %78 : vector<2x32xf32>
    %81 = arith.divf %79, %80 : vector<2x32xf32>
    %82 = vector.extract_strided_slice %69 {offsets = [0, 64], sizes = [2, 32], strides = [1, 1]} : vector<2x128xf32> to vector<2x32xf32>
    %83 = math.tanh %82 : vector<2x32xf32>
    %84 = vector.extract_strided_slice %69 {offsets = [0, 96], sizes = [2, 32], strides = [1, 1]} : vector<2x128xf32> to vector<2x32xf32>
    %85 = arith.negf %84 : vector<2x32xf32>
    %86 = math.exp %85 : vector<2x32xf32>
    %cst_23 = arith.constant 1.000000e+00 : f32
    %87 = vector.broadcast %cst_23 : f32 to vector<2x32xf32>
    %88 = arith.addf %87, %86 : vector<2x32xf32>
    %89 = arith.divf %87, %88 : vector<2x32xf32>
    %90 = arith.mulf %81, %63 : vector<2x32xf32>
    %91 = arith.mulf %75, %83 : vector<2x32xf32>
    %92 = arith.addf %90, %91 : vector<2x32xf32>
    %93 = math.tanh %92 : vector<2x32xf32>
    %94 = arith.mulf %89, %93 : vector<2x32xf32>
    %c4 = arith.constant 4 : index
    %c0_24 = arith.constant 0 : index
    %95 = vector.load %arg5[%c4, %c0_24] : memref<16x32xf32, #tpu.memory_space<vmem>>, vector<2x32xf32>
    tpu.vector_store %arg5[%c4, %c0_24], %94 {strides = array<i32>} : memref<16x32xf32, #tpu.memory_space<vmem>>, vector<2x32xf32>,
    %96 = vector.extract_strided_slice %5 {offsets = [6, 0], sizes = [2, 128], strides = [1, 1]} : vector<16x128xf32> to vector<2x128xf32>
    %cst_25 = arith.constant dense<0.000000e+00> : vector<2x128xf32>
    %97 = tpu.matmul %94, %6, %cst_25 {dimension_numbers = #tpu.dot_dimension_numbers<[1], [0], [0], [1], [0, 0, 1, 1], [], []>} : vector<2x32xf32>, vector<32x128xf32>, vector<2x128xf32> -> vector<2x128xf32>
    %98 = arith.addf %96, %97 : vector<2x128xf32>
    %99 = vector.extract_strided_slice %98 {offsets = [0, 0], sizes = [2, 32], strides = [1, 1]} : vector<2x128xf32> to vector<2x32xf32>
    %100 = arith.negf %99 : vector<2x32xf32>
    %101 = math.exp %100 : vector<2x32xf32>
    %cst_26 = arith.constant 1.000000e+00 : f32
    %102 = vector.broadcast %cst_26 : f32 to vector<2x32xf32>
    %103 = arith.addf %102, %101 : vector<2x32xf32>
    %104 = arith.divf %102, %103 : vector<2x32xf32>
    %105 = vector.extract_strided_slice %98 {offsets = [0, 32], sizes = [2, 32], strides = [1, 1]} : vector<2x128xf32> to vector<2x32xf32>
    %106 = arith.negf %105 : vector<2x32xf32>
    %107 = math.exp %106 : vector<2x32xf32>
    %cst_27 = arith.constant 1.000000e+00 : f32
    %108 = vector.broadcast %cst_27 : f32 to vector<2x32xf32>
    %109 = arith.addf %108, %107 : vector<2x32xf32>
    %110 = arith.divf %108, %109 : vector<2x32xf32>
    %111 = vector.extract_strided_slice %98 {offsets = [0, 64], sizes = [2, 32], strides = [1, 1]} : vector<2x128xf32> to vector<2x32xf32>
    %112 = math.tanh %111 : vector<2x32xf32>
    %113 = vector.extract_strided_slice %98 {offsets = [0, 96], sizes = [2, 32], strides = [1, 1]} : vector<2x128xf32> to vector<2x32xf32>
    %114 = arith.negf %113 : vector<2x32xf32>
    %115 = math.exp %114 : vector<2x32xf32>
    %cst_28 = arith.constant 1.000000e+00 : f32
    %116 = vector.broadcast %cst_28 : f32 to vector<2x32xf32>
    %117 = arith.addf %116, %115 : vector<2x32xf32>
    %118 = arith.divf %116, %117 : vector<2x32xf32>
    %119 = arith.mulf %110, %92 : vector<2x32xf32>
    %120 = arith.mulf %104, %112 : vector<2x32xf32>
    %121 = arith.addf %119, %120 : vector<2x32xf32>
    %122 = math.tanh %121 : vector<2x32xf32>
    %123 = arith.mulf %118, %122 : vector<2x32xf32>
    %c6 = arith.constant 6 : index
    %c0_29 = arith.constant 0 : index
    %124 = vector.load %arg5[%c6, %c0_29] : memref<16x32xf32, #tpu.memory_space<vmem>>, vector<2x32xf32>
    tpu.vector_store %arg5[%c6, %c0_29], %123 {strides = array<i32>} : memref<16x32xf32, #tpu.memory_space<vmem>>, vector<2x32xf32>,
    %125 = vector.extract_strided_slice %5 {offsets = [8, 0], sizes = [2, 128], strides = [1, 1]} : vector<16x128xf32> to vector<2x128xf32>
    %cst_30 = arith.constant dense<0.000000e+00> : vector<2x128xf32>
    %126 = tpu.matmul %123, %6, %cst_30 {dimension_numbers = #tpu.dot_dimension_numbers<[1], [0], [0], [1], [0, 0, 1, 1], [], []>} : vector<2x32xf32>, vector<32x128xf32>, vector<2x128xf32> -> vector<2x128xf32>
    %127 = arith.addf %125, %126 : vector<2x128xf32>
    %128 = vector.extract_strided_slice %127 {offsets = [0, 0], sizes = [2, 32], strides = [1, 1]} : vector<2x128xf32> to vector<2x32xf32>
    %129 = arith.negf %128 : vector<2x32xf32>
    %130 = math.exp %129 : vector<2x32xf32>
    %cst_31 = arith.constant 1.000000e+00 : f32
    %131 = vector.broadcast %cst_31 : f32 to vector<2x32xf32>
    %132 = arith.addf %131, %130 : vector<2x32xf32>
    %133 = arith.divf %131, %132 : vector<2x32xf32>
    %134 = vector.extract_strided_slice %127 {offsets = [0, 32], sizes = [2, 32], strides = [1, 1]} : vector<2x128xf32> to vector<2x32xf32>
    %135 = arith.negf %134 : vector<2x32xf32>
    %136 = math.exp %135 : vector<2x32xf32>
    %cst_32 = arith.constant 1.000000e+00 : f32
    %137 = vector.broadcast %cst_32 : f32 to vector<2x32xf32>
    %138 = arith.addf %137, %136 : vector<2x32xf32>
    %139 = arith.divf %137, %138 : vector<2x32xf32>
    %140 = vector.extract_strided_slice %127 {offsets = [0, 64], sizes = [2, 32], strides = [1, 1]} : vector<2x128xf32> to vector<2x32xf32>
    %141 = math.tanh %140 : vector<2x32xf32>
    %142 = vector.extract_strided_slice %127 {offsets = [0, 96], sizes = [2, 32], strides = [1, 1]} : vector<2x128xf32> to vector<2x32xf32>
    %143 = arith.negf %142 : vector<2x32xf32>
    %144 = math.exp %143 : vector<2x32xf32>
    %cst_33 = arith.constant 1.000000e+00 : f32
    %145 = vector.broadcast %cst_33 : f32 to vector<2x32xf32>
    %146 = arith.addf %145, %144 : vector<2x32xf32>
    %147 = arith.divf %145, %146 : vector<2x32xf32>
    %148 = arith.mulf %139, %121 : vector<2x32xf32>
    %149 = arith.mulf %133, %141 : vector<2x32xf32>
    %150 = arith.addf %148, %149 : vector<2x32xf32>
    %151 = math.tanh %150 : vector<2x32xf32>
    %152 = arith.mulf %147, %151 : vector<2x32xf32>
    %c8 = arith.constant 8 : index
    %c0_34 = arith.constant 0 : index
    %153 = vector.load %arg5[%c8, %c0_34] : memref<16x32xf32, #tpu.memory_space<vmem>>, vector<2x32xf32>
    tpu.vector_store %arg5[%c8, %c0_34], %152 {strides = array<i32>} : memref<16x32xf32, #tpu.memory_space<vmem>>, vector<2x32xf32>,
    %154 = vector.extract_strided_slice %5 {offsets = [10, 0], sizes = [2, 128], strides = [1, 1]} : vector<16x128xf32> to vector<2x128xf32>
    %cst_35 = arith.constant dense<0.000000e+00> : vector<2x128xf32>
    %155 = tpu.matmul %152, %6, %cst_35 {dimension_numbers = #tpu.dot_dimension_numbers<[1], [0], [0], [1], [0, 0, 1, 1], [], []>} : vector<2x32xf32>, vector<32x128xf32>, vector<2x128xf32> -> vector<2x128xf32>
    %156 = arith.addf %154, %155 : vector<2x128xf32>
    %157 = vector.extract_strided_slice %156 {offsets = [0, 0], sizes = [2, 32], strides = [1, 1]} : vector<2x128xf32> to vector<2x32xf32>
    %158 = arith.negf %157 : vector<2x32xf32>
    %159 = math.exp %158 : vector<2x32xf32>
    %cst_36 = arith.constant 1.000000e+00 : f32
    %160 = vector.broadcast %cst_36 : f32 to vector<2x32xf32>
    %161 = arith.addf %160, %159 : vector<2x32xf32>
    %162 = arith.divf %160, %161 : vector<2x32xf32>
    %163 = vector.extract_strided_slice %156 {offsets = [0, 32], sizes = [2, 32], strides = [1, 1]} : vector<2x128xf32> to vector<2x32xf32>
    %164 = arith.negf %163 : vector<2x32xf32>
    %165 = math.exp %164 : vector<2x32xf32>
    %cst_37 = arith.constant 1.000000e+00 : f32
    %166 = vector.broadcast %cst_37 : f32 to vector<2x32xf32>
    %167 = arith.addf %166, %165 : vector<2x32xf32>
    %168 = arith.divf %166, %167 : vector<2x32xf32>
    %169 = vector.extract_strided_slice %156 {offsets = [0, 64], sizes = [2, 32], strides = [1, 1]} : vector<2x128xf32> to vector<2x32xf32>
    %170 = math.tanh %169 : vector<2x32xf32>
    %171 = vector.extract_strided_slice %156 {offsets = [0, 96], sizes = [2, 32], strides = [1, 1]} : vector<2x128xf32> to vector<2x32xf32>
    %172 = arith.negf %171 : vector<2x32xf32>
    %173 = math.exp %172 : vector<2x32xf32>
    %cst_38 = arith.constant 1.000000e+00 : f32
    %174 = vector.broadcast %cst_38 : f32 to vector<2x32xf32>
    %175 = arith.addf %174, %173 : vector<2x32xf32>
    %176 = arith.divf %174, %175 : vector<2x32xf32>
    %177 = arith.mulf %168, %150 : vector<2x32xf32>
    %178 = arith.mulf %162, %170 : vector<2x32xf32>
    %179 = arith.addf %177, %178 : vector<2x32xf32>
    %180 = math.tanh %179 : vector<2x32xf32>
    %181 = arith.mulf %176, %180 : vector<2x32xf32>
    %c10 = arith.constant 10 : index
    %c0_39 = arith.constant 0 : index
    %182 = vector.load %arg5[%c10, %c0_39] : memref<16x32xf32, #tpu.memory_space<vmem>>, vector<2x32xf32>
    tpu.vector_store %arg5[%c10, %c0_39], %181 {strides = array<i32>} : memref<16x32xf32, #tpu.memory_space<vmem>>, vector<2x32xf32>,
    %183 = vector.extract_strided_slice %5 {offsets = [12, 0], sizes = [2, 128], strides = [1, 1]} : vector<16x128xf32> to vector<2x128xf32>
    %cst_40 = arith.constant dense<0.000000e+00> : vector<2x128xf32>
    %184 = tpu.matmul %181, %6, %cst_40 {dimension_numbers = #tpu.dot_dimension_numbers<[1], [0], [0], [1], [0, 0, 1, 1], [], []>} : vector<2x32xf32>, vector<32x128xf32>, vector<2x128xf32> -> vector<2x128xf32>
    %185 = arith.addf %183, %184 : vector<2x128xf32>
    %186 = vector.extract_strided_slice %185 {offsets = [0, 0], sizes = [2, 32], strides = [1, 1]} : vector<2x128xf32> to vector<2x32xf32>
    %187 = arith.negf %186 : vector<2x32xf32>
    %188 = math.exp %187 : vector<2x32xf32>
    %cst_41 = arith.constant 1.000000e+00 : f32
    %189 = vector.broadcast %cst_41 : f32 to vector<2x32xf32>
    %190 = arith.addf %189, %188 : vector<2x32xf32>
    %191 = arith.divf %189, %190 : vector<2x32xf32>
    %192 = vector.extract_strided_slice %185 {offsets = [0, 32], sizes = [2, 32], strides = [1, 1]} : vector<2x128xf32> to vector<2x32xf32>
    %193 = arith.negf %192 : vector<2x32xf32>
    %194 = math.exp %193 : vector<2x32xf32>
    %cst_42 = arith.constant 1.000000e+00 : f32
    %195 = vector.broadcast %cst_42 : f32 to vector<2x32xf32>
    %196 = arith.addf %195, %194 : vector<2x32xf32>
    %197 = arith.divf %195, %196 : vector<2x32xf32>
    %198 = vector.extract_strided_slice %185 {offsets = [0, 64], sizes = [2, 32], strides = [1, 1]} : vector<2x128xf32> to vector<2x32xf32>
    %199 = math.tanh %198 : vector<2x32xf32>
    %200 = vector.extract_strided_slice %185 {offsets = [0, 96], sizes = [2, 32], strides = [1, 1]} : vector<2x128xf32> to vector<2x32xf32>
    %201 = arith.negf %200 : vector<2x32xf32>
    %202 = math.exp %201 : vector<2x32xf32>
    %cst_43 = arith.constant 1.000000e+00 : f32
    %203 = vector.broadcast %cst_43 : f32 to vector<2x32xf32>
    %204 = arith.addf %203, %202 : vector<2x32xf32>
    %205 = arith.divf %203, %204 : vector<2x32xf32>
    %206 = arith.mulf %197, %179 : vector<2x32xf32>
    %207 = arith.mulf %191, %199 : vector<2x32xf32>
    %208 = arith.addf %206, %207 : vector<2x32xf32>
    %209 = math.tanh %208 : vector<2x32xf32>
    %210 = arith.mulf %205, %209 : vector<2x32xf32>
    %c12 = arith.constant 12 : index
    %c0_44 = arith.constant 0 : index
    %211 = vector.load %arg5[%c12, %c0_44] : memref<16x32xf32, #tpu.memory_space<vmem>>, vector<2x32xf32>
    tpu.vector_store %arg5[%c12, %c0_44], %210 {strides = array<i32>} : memref<16x32xf32, #tpu.memory_space<vmem>>, vector<2x32xf32>,
    %212 = vector.extract_strided_slice %5 {offsets = [14, 0], sizes = [2, 128], strides = [1, 1]} : vector<16x128xf32> to vector<2x128xf32>
    %cst_45 = arith.constant dense<0.000000e+00> : vector<2x128xf32>
    %213 = tpu.matmul %210, %6, %cst_45 {dimension_numbers = #tpu.dot_dimension_numbers<[1], [0], [0], [1], [0, 0, 1, 1], [], []>} : vector<2x32xf32>, vector<32x128xf32>, vector<2x128xf32> -> vector<2x128xf32>
    %214 = arith.addf %212, %213 : vector<2x128xf32>
    %215 = vector.extract_strided_slice %214 {offsets = [0, 0], sizes = [2, 32], strides = [1, 1]} : vector<2x128xf32> to vector<2x32xf32>
    %216 = arith.negf %215 : vector<2x32xf32>
    %217 = math.exp %216 : vector<2x32xf32>
    %cst_46 = arith.constant 1.000000e+00 : f32
    %218 = vector.broadcast %cst_46 : f32 to vector<2x32xf32>
    %219 = arith.addf %218, %217 : vector<2x32xf32>
    %220 = arith.divf %218, %219 : vector<2x32xf32>
    %221 = vector.extract_strided_slice %214 {offsets = [0, 32], sizes = [2, 32], strides = [1, 1]} : vector<2x128xf32> to vector<2x32xf32>
    %222 = arith.negf %221 : vector<2x32xf32>
    %223 = math.exp %222 : vector<2x32xf32>
    %cst_47 = arith.constant 1.000000e+00 : f32
    %224 = vector.broadcast %cst_47 : f32 to vector<2x32xf32>
    %225 = arith.addf %224, %223 : vector<2x32xf32>
    %226 = arith.divf %224, %225 : vector<2x32xf32>
    %227 = vector.extract_strided_slice %214 {offsets = [0, 64], sizes = [2, 32], strides = [1, 1]} : vector<2x128xf32> to vector<2x32xf32>
    %228 = math.tanh %227 : vector<2x32xf32>
    %229 = vector.extract_strided_slice %214 {offsets = [0, 96], sizes = [2, 32], strides = [1, 1]} : vector<2x128xf32> to vector<2x32xf32>
    %230 = arith.negf %229 : vector<2x32xf32>
    %231 = math.exp %230 : vector<2x32xf32>
    %cst_48 = arith.constant 1.000000e+00 : f32
    %232 = vector.broadcast %cst_48 : f32 to vector<2x32xf32>
    %233 = arith.addf %232, %231 : vector<2x32xf32>
    %234 = arith.divf %232, %233 : vector<2x32xf32>
    %235 = arith.mulf %226, %208 : vector<2x32xf32>
    %236 = arith.mulf %220, %228 : vector<2x32xf32>
    %237 = arith.addf %235, %236 : vector<2x32xf32>
    %238 = math.tanh %237 : vector<2x32xf32>
    %239 = arith.mulf %234, %238 : vector<2x32xf32>
    %c14 = arith.constant 14 : index
    %c0_49 = arith.constant 0 : index
    %240 = vector.load %arg5[%c14, %c0_49] : memref<16x32xf32, #tpu.memory_space<vmem>>, vector<2x32xf32>
    tpu.vector_store %arg5[%c14, %c0_49], %239 {strides = array<i32>} : memref<16x32xf32, #tpu.memory_space<vmem>>, vector<2x32xf32>,
    %c0_50 = arith.constant 0 : index
    %c0_51 = arith.constant 0 : index
    %241 = vector.load %arg6[%c0_50, %c0_51] : memref<2x32xf32, #tpu.memory_space<vmem>>, vector<2x32xf32>
    tpu.vector_store %arg6[%c0_50, %c0_51], %239 {strides = array<i32>} : memref<2x32xf32, #tpu.memory_space<vmem>>, vector<2x32xf32>,
    %c0_52 = arith.constant 0 : index
    %c0_53 = arith.constant 0 : index
    %242 = vector.load %arg7[%c0_52, %c0_53] : memref<2x32xf32, #tpu.memory_space<vmem>>, vector<2x32xf32>
    tpu.vector_store %arg7[%c0_52, %c0_53], %237 {strides = array<i32>} : memref<2x32xf32, #tpu.memory_space<vmem>>, vector<2x32xf32>,
    return
  }
  func.func @transform_0(%arg0: i32) -> (i32, i32) {
    %c0_i32 = arith.constant 0 : i32
    %c0_i32_0 = arith.constant 0 : i32
    %c0_i32_1 = arith.constant 0 : i32
    return %c0_i32, %c0_i32_0 : i32, i32
  }
  func.func @transform_1(%arg0: i32) -> (i32, i32) {
    %c0_i32 = arith.constant 0 : i32
    %c0_i32_0 = arith.constant 0 : i32
    %c0_i32_1 = arith.constant 0 : i32
    return %c0_i32, %c0_i32_0 : i32, i32
  }
  func.func @transform_2(%arg0: i32) -> (i32, i32) {
    %c0_i32 = arith.constant 0 : i32
    %c0_i32_0 = arith.constant 0 : i32
    %c0_i32_1 = arith.constant 0 : i32
    return %c0_i32, %c0_i32_0 : i32, i32
  }
  func.func @transform_3(%arg0: i32) -> (i32, i32) {
    %c0_i32 = arith.constant 0 : i32
    %c0_i32_0 = arith.constant 0 : i32
    %c0_i32_1 = arith.constant 0 : i32
    return %c0_i32, %c0_i32_0 : i32, i32
  }
  func.func @transform_4(%arg0: i32) -> (i32, i32) {
    %c0_i32 = arith.constant 0 : i32
    %c0_i32_0 = arith.constant 0 : i32
    %c0_i32_1 = arith.constant 0 : i32
    return %c0_i32, %c0_i32_0 : i32, i32
  }
  func.func @transform_5(%arg0: i32) -> (i32, i32) {
    %c0_i32 = arith.constant 0 : i32
    %c0_i32_0 = arith.constant 0 : i32
    %c0_i32_1 = arith.constant 0 : i32
    return %c0_i32, %c0_i32_0 : i32, i32
  }
  func.func @transform_6(%arg0: i32) -> (i32, i32) {
    %c0_i32 = arith.constant 0 : i32
    %c0_i32_0 = arith.constant 0 : i32
    %c0_i32_1 = arith.constant 0 : i32
    return %c0_i32, %c0_i32_0 : i32, i32
  }
}

</mosaic_0001>

<bundles_post_ra>
// kernel: tpu_custom_call.1
= control target key start
LH: loop header
LB: loop body
LE: loop exit
PB: predicated region body
PF: predicated region fallthrough
CT: control target
= control target key end

     0   :  { %12 = vsyncpa [#allocation3], 0  ;;  %s1838_s0 = inlined_call_operand.hbm [shape: f32[16,64], index: 0, kind: input, shape index: {}]   ;;  %s1839_s1 = inlined_call_operand.hbm [shape: f32[64,128], index: 1, kind: input, shape index: {}]   ;;  %s1840_s2 = inlined_call_operand.hbm [shape: f32[32,128], index: 2, kind: input, shape index: {}]   ;;  %s1841_s3 = inlined_call_operand.vmem [shape: f32[1,128], index: 3, kind: input, shape index: {}]   ;;  %s1842_s4 = inlined_call_operand.hbm [shape: f32[16,32], index: 4, kind: output, shape index: {0}]   ;;  %s1843_s5 = inlined_call_operand.hbm [shape: f32[2,32], index: 5, kind: output, shape index: {1}]   ;;  %s1844_s6 = inlined_call_operand.hbm [shape: f32[2,32], index: 6, kind: output, shape index: {2}]  }
   0x1   :  { %13 = vsyncpa [#allocation6], 0 }
   0x2   :  { %14 = vsyncpa [#allocation4], 0 }
   0x3   :  { %15 = vsyncpa [#allocation10], 0  ;;  %s1550_s21 = smov [#allocation5]   ;;  %s1551_s23 = smov [#allocation2]  }
   0x4   :  { %s33_s22 = sshll.u32 %s1550_s21, 4  ;;  %s21_s24 = sshll.u32 %s1551_s23, 4  ;;  %s34_s22 = int_to_ptr.vmem [resolvable:$true] %s33_s22  ;;  %s1599_s24 = int_to_ptr.vmem [resolvable:$true] %s21_s24 }
   0x5   :  { %s1410_s27 = scalar_lea.hbm %s1839_s1, 1024 }
   0x6   :  { %p1411_p0 = scmp.ne.s32.totalorder %s1839_s1, %s1410_s27  ;;  %p1414_p1 = scmp.lt.u32.totalorder %s1410_s27, %s1839_s1 }
   0x8   :  { %p1416_p2 = pnand %p1414_p1, %p1411_p0 }
   0xa   :  { %1419 = shalt.err (!%p1416_p2)
}
   0xb   :  { %s1420_s8 = scalar_lea.vmem %s34_s22, 1024  ;;  %p1425_p4 = scmp.lt.s32.totalorder %s34_s22, %s34_s22 }
   0xc   :  { %p1421_p3 = scmp.ne.s32.totalorder %s34_s22, %s1420_s8  ;;  %p1426_p5 = scmp.lt.s32.totalorder %s1420_s8, %s1420_s8 }
   0xe   :  { %p1427_p6 = por %p1426_p5, %p1425_p4 }
  0x10   :  { %p1428_p7 = pnand %p1427_p6, %p1421_p3 }
  0x12   :  { %1431 = shalt.err (!%p1428_p7)
}
  0x13   :  { %s1552_s9 = smov 128   ;;  %s1553_s10 = smov 8  }
  0x14   :  { %39 = dma.hbm_to_vmem [thread:$0]  %s1839_s1, 1024, %s34_s22, [#allocation6], %s1552_s9, %s1552_s9, %s1553_s10  }
  0x15   :  { %s1432_s15 = scalar_lea.hbm %s1838_s0, 256 }
  0x16   :  { %p1433_p8 = scmp.ne.s32.totalorder %s1838_s0, %s1432_s15  ;;  %p1436_p9 = scmp.lt.u32.totalorder %s1432_s15, %s1838_s0 }
  0x18   :  { %p1438_p10 = pnand %p1436_p9, %p1433_p8 }
  0x1a   :  { %1441 = shalt.err (!%p1438_p10)
}
  0x1b   :  { %s1442_s20 = scalar_lea.vmem %s1599_s24, 256  ;;  %p1447_p12 = scmp.lt.s32.totalorder %s1599_s24, %s1599_s24 }
  0x1c   :  { %p1443_p11 = scmp.ne.s32.totalorder %s1599_s24, %s1442_s20  ;;  %p1448_p13 = scmp.lt.s32.totalorder %s1442_s20, %s1442_s20 }
  0x1e   :  { %p1449_p0 = por %p1448_p13, %p1447_p12 }
  0x20   :  { %p1450_p1 = pnand %p1449_p0, %p1443_p11 }
  0x22   :  { %1453 = shalt.err (!%p1450_p1)
}
  0x23   :  { %27 = dma.hbm_to_vmem [thread:$0]  %s1838_s0, 256, %s1599_s24, [#allocation3], %s1552_s9, %s1552_s9, %s1553_s10  }
  0x24   :  { %s1554_s22 = smov [#allocation7]   ;;  %s1454_s27 = scalar_lea.hbm %s1840_s2, 512 }
  0x25   :  { %s45_s23 = sshll.u32 %s1554_s22, 4  ;;  %p1455_p2 = scmp.ne.s32.totalorder %s1840_s2, %s1454_s27  ;;  %s46_s23 = int_to_ptr.vmem [resolvable:$true] %s45_s23 }
  0x26   :  { %p1458_p3 = scmp.lt.u32.totalorder %s1454_s27, %s1840_s2 }
  0x28   :  { %p1460_p4 = pnand %p1458_p3, %p1455_p2 }
  0x2a   :  { %1463 = shalt.err (!%p1460_p4)
}
  0x2b   :  { %s1464_s8 = scalar_lea.vmem %s46_s23, 512  ;;  %p1469_p6 = scmp.lt.s32.totalorder %s46_s23, %s46_s23 }
  0x2c   :  { %p1465_p5 = scmp.ne.s32.totalorder %s46_s23, %s1464_s8  ;;  %p1470_p7 = scmp.lt.s32.totalorder %s1464_s8, %s1464_s8 }
  0x2e   :  { %p1471_p8 = por %p1470_p7, %p1469_p6 }
  0x30   :  { %p1472_p9 = pnand %p1471_p8, %p1465_p5 }
  0x32   :  { %1475 = shalt.err (!%p1472_p9)
}
  0x33   :  { %51 = dma.hbm_to_vmem [thread:$0]  %s1840_s2, 512, %s46_s23, [#allocation6], %s1552_s9, %s1552_s9, %s1553_s10  }
  0x34   :  { %1542 = dma.done.wait [#allocation3], 256  }
  0x35   :  { %1543 = vsyncadd [#allocation3], 4294967040 }
  0x36   :  { %1544 = dma.done.wait [#allocation6], 1536  }
  0x37   :  { %1545 = vsyncadd [#allocation6], 4294965760  ;;  %v1555_v0 = vmov 0.0|0.0   ;;  %vm1556_vm0 = vmmov 0   ;;  %v1557_v1 = vmov 0.0   ;;  %v65_v2 = vld [vmem:[#allocation5] sm:$0xff] }
  0x38   :  { %1284 = vmatprep.subr.bf16.mxu1 %v1555_v0  ;;  %1188 = vmatprep.mubr.msk.f32.mxu1 %vm1556_vm0, %v1557_v1  ;;  %v66_v3 = vld [vmem:[#allocation5 + $0x8] sm:$0xff]  ;;  %v67_v4 = vld [vmem:[#allocation5 + $0x10] sm:$0xff]  ;;  %v68_v6 = vld [vmem:[#allocation5 + $0x18] sm:$0xff]  ;;  %vm80_vm1 = vcmask 523264   ;;  %s1558_s12 = smov 64   ;;  %vm269_vm2 = vcmask 254976  }
  0x39   :  { %v1268_v5 = vpack.c.bf16 %v66_v3, %v65_v2  ;;  %v69_v7 = vld [vmem:[#allocation5 + $0x20] sm:$0xff]  ;;  %v1272_v8 = vpack.c.bf16 %v68_v6, %v67_v4  ;;  %v70_v9 = vld [vmem:[#allocation5 + $0x28] sm:$0xff]  ;;  %v63_v13 = vld [vmem:[#allocation2] sm:$0xff]  ;;  %vm166_vm3 = vcmask 261120   ;;  %vm490_vm4 = vcmask 259076   ;;  %s1560_s13 = smov 96  }
  0x3a   :  { %v162_v10 = vld [vmem:[#allocation7] sm:$0xff]  ;;  %v163_v11 = vld [vmem:[#allocation7 + $0x8] sm:$0xff]  ;;  %v164_v14 = vld [vmem:[#allocation7 + $0x10] sm:$0xff]  ;;  %1177 = vmatprep.mubr.msk.f32.mxu0 %vm80_vm1, %v63_v13  ;;  %v1276_v16 = vpack.c.bf16 %v70_v9, %v69_v7  ;;  %vm378_vm5 = vcmask 257026   ;;  %vm602_vm6 = vcmask 261126   ;;  %s1561_s14 = smov [#allocation9]  }
  0x3b   :  { %1269 = vmatprep.subr.bf16.mxu0 %v1268_v5  ;;  %v1654_v12 = vpack.c.bf16 %v163_v11, %v162_v10  ;;  %v165_v15 = vld [vmem:[#allocation7 + $0x18] sm:$0xff]  ;;  %v71_v18 = vld [vmem:[#allocation5 + $0x30] sm:$0xff]  ;;  %s1066_s15 = sshll.u32 %s1561_s14, 4  ;;  %s1562_s16 = smov [#allocation8]   ;;  %s1067_s15 = int_to_ptr.vmem [resolvable:$true] %s1066_s15 }
  0x3c   :  { %1271 = vmatpush3.bf16.msra.mxu0 %v1268_v5  ;;  %v1658_v17 = vpack.c.bf16 %v165_v15, %v164_v14  ;;  %v72_v19 = vld [vmem:[#allocation5 + $0x38] sm:$0xff]  ;;  %v1093_v24 = vld [vmem:[%s1841_s3] ss:$0 sm:$0xff]  ;;  %s1559_s3 = smov 32   ;;  %s1053_s17 = sshll.u32 %s1562_s16, 4  ;;  %s1782_s17 = int_to_ptr.vmem [resolvable:$true] %s1053_s17 }
  0x3d   :  { %1273 = vmatprep.subr.bf16.mxu0 %v1272_v8  ;;  %1286 = vmatpush3.bf16.msra.mxu1 %v1654_v12  ;;  %v1280_v20 = vpack.c.bf16 %v72_v19, %v71_v18  ;;  %v64_v21 = vld [vmem:[#allocation2 + $0x8] sm:$0xff]  ;;  %s1563_s18 = smov [#allocation11]   ;;  %s1476_s20 = scalar_lea.vmem %s1067_s15, 32 }
  0x3e   :  { %1287 = vmatprep.subr.bf16.mxu1 %v1555_v0  ;;  %s1076_s19 = sshll.u32 %s1563_s18, 4  ;;  %p1477_p10 = scmp.ne.s32.totalorder %s1067_s15, %s1476_s20  ;;  %s1786_s19 = int_to_ptr.vmem [resolvable:$true] %s1076_s19 }
  0x3f   :  { %p1481_p11 = scmp.lt.s32.totalorder %s1067_s15, %s1067_s15  ;;  %p1482_p12 = scmp.lt.s32.totalorder %s1476_s20, %s1476_s20 }
  0x40   :  { %1275 = vmatpush3.bf16.msra.mxu0 %v1272_v8 }
  0x41   :  { %1277 = vmatprep.subr.bf16.mxu0 %v1276_v16  ;;  %1289 = vmatpush3.bf16.msra.mxu1 %v1658_v17  ;;  %p1483_p13 = por %p1482_p12, %p1481_p11 }
  0x42   :  { %1290 = vmatprep.subr.bf16.mxu1 %v1555_v0 }
  0x43   :  { %p1484_p0 = pnand %p1483_p13, %p1477_p10 }
  0x44   :  { %1279 = vmatpush3.bf16.msra.mxu0 %v1276_v16  ;;  %1189 = vmatmul.mubr.f32.vlgmr.msra.gmra.mrb[0].mxu1 %v1557_v1 }
  0x45   :  { %1281 = vmatprep.subr.bf16.mxu0 %v1280_v20  ;;  %1292 = vmatpush3.bf16.msra.mxu1 %v1654_v12 }
  0x46   :  { %1293 = vmatprep.subr.bf16.mxu1 %v1555_v0  ;;  %1199 = vmatprep.mubr.msk.f32.mxu1 %vm1556_vm0, %v1557_v1 }
  0x48   :  { %1283 = vmatpush3.bf16.msra.mxu0 %v1280_v20 }
  0x49   :  { %1295 = vmatpush3.bf16.msra.mxu1 %v1658_v17  ;;  %1296 = vmatprep.subr.bf16.mxu0 %v1555_v0 }
  0x4a   :  { %1302 = vmatprep.subr.bf16.mxu1 %v1555_v0 }
  0x4b   :  { %1178 = vmatmul.mubr.msk.f32.vlgmr.msra.gmra.mrb[0].mxu0 %vm80_vm1, %v64_v21 }
  0x4c   :  { %1298 = vmatpush3.bf16.msra.mxu0 %v1654_v12  ;;  %1210 = vmatprep.mubr.msk.f32.mxu0 %vm1556_vm0, %v1557_v1 }
  0x4d   :  { %1299 = vmatprep.subr.bf16.mxu0 %v1555_v0 }
  0x50   :  { %1301 = vmatpush3.bf16.msra.mxu0 %v1658_v17 }
  0x51   :  { %1308 = vmatprep.subr.bf16.mxu0 %v1555_v0 }
 0x117   :  { %v236_v22 = vpop.f32.mrb[0].mxu1 }
 0x118   :  { %v1190_v23 = vpop.f32.mrb[1].mxu1 }
 0x11e   :  { %v1179_v25 = vpop.f32.mrb[0].mxu0 }
 0x11f   :  { %v1681_v26 = vadd.f32 %v1179_v25, %v1093_v24  ;;  %v153_v27 = vpop.f32.mrb[1].mxu0 }
 0x120   :  { %v1683_v28 = vadd.f32 %v1093_v24, %v153_v27 }
 0x122   :  { %v240_v29 = vadd.f32 %v236_v22, %v1683_v28 }
 0x124   :  { %1346 = vtanh.f32 %v240_v29  ;;  %v1096_v31 = vmul.f32 -1.442695, %v240_v29 }
 0x126   :  { %1348 = vpow2.f32 %v1096_v31 }
 0x12e   :  { %v1347_v30 = vpop.eup %1346 }
 0x12f   :  { %250 = vrot.lane.b32.xlu0 %v1347_v30, %s1558_s12 }
 0x130   :  { %v1349_v32 = vpop.eup %1348 }
 0x131   :  { %v244_v33 = vadd.f32 1.0, %v1349_v32 }
 0x133   :  { %1350 = vrcp.f32 %v244_v33 }
 0x13d   :  { %v1351_v34 = vpop.eup %1350 }
 0x13e   :  { %v248_v37 = vmul.f32 0.0, %v1351_v34 }
 0x1a1   :  { %v251_v35 = vpop.permute.xlu0 %250 }
 0x1a2   :  { %v253_v36 = vmul.f32 %v1351_v34, %v251_v35 }
 0x1a4   :  { %255 = vrot.lane.b32.xlu0 %v253_v36, %s1559_s3 }
 0x216   :  { %v256_v38 = vpop.permute.xlu0 %255 }
 0x217   :  { %v258_v39 = vadd.f32 %v256_v38, %v248_v37 }
 0x219   :  { %1352 = vtanh.f32 %v258_v39  ;;  %v355_v55 = vrot.slane %v258_v39, 6 }
 0x223   :  { %v1353_v40 = vpop.eup %1352 }
 0x224   :  { %261 = vrot.lane.b32.xlu1 %v1353_v40, %s1558_s12 }
 0x296   :  { %v262_v41 = vpop.permute.xlu1 %261 }
 0x297   :  { %v264_v42 = vmul.f32 %v1351_v34, %v262_v41 }
 0x299   :  { %266 = vrot.lane.b32.xlu1 %v264_v42, %s1559_s3 }
 0x30b   :  { %v267_v43 = vpop.permute.xlu1 %266 }
 0x30c   :  { %270 = vst.msk [vmem:[#allocation8] sm:$0x3] %vm269_vm2, %v267_v43  ;;  %1200 = vmatmul.mubr.msk.f32.vlgmr.msra.gmra.mrb[2].mxu1 %vm166_vm3, %v267_v43 }
 0x30d   :  { %1304 = vmatpush3.bf16.msra.mxu1 %v1654_v12  ;;  %1221 = vmatprep.mubr.msk.f32.mxu1 %vm1556_vm0, %v1557_v1 }
 0x30e   :  { %1305 = vmatprep.subr.bf16.mxu1 %v1555_v0 }
 0x311   :  { %1307 = vmatpush3.bf16.msra.mxu1 %v1658_v17 }
 0x312   :  { %1314 = vmatprep.subr.bf16.mxu1 %v1555_v0 }
 0x3df   :  { %v339_v44 = vpop.f32.mrb[2].mxu1 }
 0x3e0   :  { %v344_v45 = vrot.slane %v339_v44, 6  ;;  %v1201_v46 = vpop.f32.mrb[3].mxu1 }
 0x3e2   :  { %v346_v47 = vadd.f32 %v344_v45, %v1683_v28 }
 0x3e4   :  { %1354 = vtanh.f32 %v346_v47  ;;  %v1098_v49 = vmul.f32 -1.442695, %v346_v47 }
 0x3e6   :  { %1356 = vpow2.f32 %v1098_v49 }
 0x3ee   :  { %v1355_v48 = vpop.eup %1354 }
 0x3ef   :  { %359 = vrot.lane.b32.xlu0 %v1355_v48, %s1558_s12 }
 0x3f0   :  { %v1357_v50 = vpop.eup %1356 }
 0x3f1   :  { %v350_v51 = vadd.f32 1.0, %v1357_v50 }
 0x3f3   :  { %1358 = vrcp.f32 %v350_v51 }
 0x3fd   :  { %v1359_v52 = vpop.eup %1358 }
 0x3fe   :  { %v357_v56 = vmul.f32 %v1359_v52, %v355_v55 }
 0x461   :  { %v360_v53 = vpop.permute.xlu0 %359 }
 0x462   :  { %v362_v54 = vmul.f32 %v1359_v52, %v360_v53 }
 0x464   :  { %364 = vrot.lane.b32.xlu1 %v362_v54, %s1559_s3 }
 0x4d6   :  { %v365_v57 = vpop.permute.xlu1 %364 }
 0x4d7   :  { %v367_v58 = vadd.f32 %v365_v57, %v357_v56 }
 0x4d9   :  { %1360 = vtanh.f32 %v367_v58  ;;  %v467_v14 = vrot.slane %v367_v58, 6 }
 0x4e3   :  { %v1361_v59 = vpop.eup %1360 }
 0x4e4   :  { %370 = vrot.lane.b32.xlu0 %v1361_v59, %s1558_s12 }
 0x556   :  { %v371_v60 = vpop.permute.xlu0 %370 }
 0x557   :  { %v1702_v61 = vmul.f32 %v1359_v52, %v371_v60 }
 0x559   :  { %v380_v62 = vrot.slane %v1702_v61, 2 }
 0x55b   :  { %381 = vrot.lane.b32.xlu1 %v380_v62, %s1559_s3 }
 0x5cd   :  { %v382_v63 = vpop.permute.xlu1 %381 }
 0x5ce   :  { %1211 = vmatmul.mubr.msk.f32.vlgmr.msra.gmra.mrb[2].mxu0 %vm166_vm3, %v382_v63 }
 0x5cf   :  { %1310 = vmatpush3.bf16.msra.mxu0 %v1654_v12  ;;  %1232 = vmatprep.mubr.msk.f32.mxu0 %vm1556_vm0, %v1557_v1 }
 0x5d0   :  { %1311 = vmatprep.subr.bf16.mxu0 %v1555_v0 }
 0x5d3   :  { %1313 = vmatpush3.bf16.msra.mxu0 %v1658_v17 }
 0x5d4   :  { %1320 = vmatprep.subr.bf16.mxu0 %v1555_v0 }
 0x6a1   :  { %v451_v2 = vpop.f32.mrb[2].mxu0 }
 0x6a2   :  { %v456_v3 = vrot.slane %v451_v2, 4  ;;  %v1212_v4 = vpop.f32.mrb[3].mxu0 }
 0x6a4   :  { %v458_v5 = vadd.f32 %v456_v3, %v1683_v28 }
 0x6a6   :  { %1362 = vtanh.f32 %v458_v5  ;;  %v1100_v7 = vmul.f32 -1.442695, %v458_v5 }
 0x6a8   :  { %1364 = vpow2.f32 %v1100_v7 }
 0x6b0   :  { %v1363_v6 = vpop.eup %1362 }
 0x6b1   :  { %471 = vrot.lane.b32.xlu0 %v1363_v6, %s1558_s12 }
 0x6b2   :  { %v1365_v8 = vpop.eup %1364 }
 0x6b3   :  { %v462_v9 = vadd.f32 1.0, %v1365_v8 }
 0x6b5   :  { %1366 = vrcp.f32 %v462_v9 }
 0x6bf   :  { %v1367_v10 = vpop.eup %1366 }
 0x6c0   :  { %v469_v15 = vmul.f32 %v1367_v10, %v467_v14 }
 0x723   :  { %v472_v11 = vpop.permute.xlu0 %471 }
 0x724   :  { %v474_v13 = vmul.f32 %v1367_v10, %v472_v11 }
 0x726   :  { %476 = vrot.lane.b32.xlu1 %v474_v13, %s1559_s3 }
 0x798   :  { %v477_v16 = vpop.permute.xlu1 %476 }
 0x799   :  { %v479_v18 = vadd.f32 %v477_v16, %v469_v15 }
 0x79b   :  { %1368 = vtanh.f32 %v479_v18  ;;  %v579_v37 = vrot.slane %v479_v18, 6 }
 0x7a5   :  { %v1369_v19 = vpop.eup %1368 }
 0x7a6   :  { %482 = vrot.lane.b32.xlu0 %v1369_v19, %s1558_s12 }
 0x818   :  { %v483_v20 = vpop.permute.xlu0 %482 }
 0x819   :  { %v1717_v21 = vmul.f32 %v1367_v10, %v483_v20 }
 0x81b   :  { %v492_v22 = vrot.slane %v1717_v21, 4 }
 0x81d   :  { %493 = vrot.lane.b32.xlu1 %v492_v22, %s1559_s3 }
 0x88f   :  { %v494_v23 = vpop.permute.xlu1 %493 }
 0x890   :  { %1222 = vmatmul.mubr.msk.f32.vlgmr.msra.gmra.mrb[4].mxu1 %vm166_vm3, %v494_v23 }
 0x891   :  { %1316 = vmatpush3.bf16.msra.mxu1 %v1654_v12  ;;  %1243 = vmatprep.mubr.msk.f32.mxu1 %vm1556_vm0, %v1557_v1 }
 0x892   :  { %1317 = vmatprep.subr.bf16.mxu1 %v1555_v0 }
 0x895   :  { %1319 = vmatpush3.bf16.msra.mxu1 %v1658_v17 }
 0x896   :  { %1326 = vmatprep.subr.bf16.mxu1 %v1555_v0 }
 0x963   :  { %v563_v24 = vpop.f32.mrb[4].mxu1 }
 0x964   :  { %v568_v25 = vrot.slane %v563_v24, 2  ;;  %v1223_v27 = vpop.f32.mrb[5].mxu1 }
 0x966   :  { %v570_v29 = vadd.f32 %v568_v25, %v1683_v28 }
 0x968   :  { %1370 = vtanh.f32 %v570_v29  ;;  %v1102_v31 = vmul.f32 -1.442695, %v570_v29 }
 0x96a   :  { %1372 = vpow2.f32 %v1102_v31 }
 0x972   :  { %v1371_v30 = vpop.eup %1370 }
 0x973   :  { %583 = vrot.lane.b32.xlu0 %v1371_v30, %s1558_s12 }
 0x974   :  { %v1373_v32 = vpop.eup %1372 }
 0x975   :  { %v574_v33 = vadd.f32 1.0, %v1373_v32 }
 0x977   :  { %1374 = vrcp.f32 %v574_v33 }
 0x981   :  { %v1375_v34 = vpop.eup %1374 }
 0x982   :  { %v581_v38 = vmul.f32 %v1375_v34, %v579_v37 }
 0x9e5   :  { %v584_v35 = vpop.permute.xlu0 %583 }
 0x9e6   :  { %v586_v36 = vmul.f32 %v1375_v34, %v584_v35 }
 0x9e8   :  { %588 = vrot.lane.b32.xlu1 %v586_v36, %s1559_s3 }
 0xa5a   :  { %v589_v39 = vpop.permute.xlu1 %588 }
 0xa5b   :  { %v591_v40 = vadd.f32 %v589_v39, %v581_v38 }
 0xa5d   :  { %1376 = vtanh.f32 %v591_v40  ;;  %v688_v55 = vrot.slane %v591_v40, 6 }
 0xa67   :  { %v1377_v28 = vpop.eup %1376 }
 0xa68   :  { %594 = vrot.lane.b32.xlu0 %v1377_v28, %s1558_s12 }
 0xada   :  { %v595_v41 = vpop.permute.xlu0 %594 }
 0xadb   :  { %v1732_v42 = vmul.f32 %v1375_v34, %v595_v41 }
 0xadd   :  { %v604_v43 = vrot.slane %v1732_v42, 6 }
 0xadf   :  { %605 = vrot.lane.b32.xlu1 %v604_v43, %s1559_s3 }
 0xb51   :  { %v606_v44 = vpop.permute.xlu1 %605 }
 0xb52   :  { %1233 = vmatmul.mubr.msk.f32.vlgmr.msra.gmra.mrb[4].mxu0 %vm166_vm3, %v606_v44 }
 0xb53   :  { %1322 = vmatpush3.bf16.msra.mxu0 %v1654_v12  ;;  %1254 = vmatprep.mubr.msk.f32.mxu0 %vm1556_vm0, %v1557_v1 }
 0xb54   :  { %1323 = vmatprep.subr.bf16.mxu0 %v1555_v0 }
 0xb57   :  { %1325 = vmatpush3.bf16.msra.mxu0 %v1658_v17 }
 0xc25   :  { %v675_v45 = vpop.f32.mrb[4].mxu0 }
 0xc26   :  { %v679_v46 = vadd.f32 %v675_v45, %v1681_v26  ;;  %v1234_v47 = vpop.f32.mrb[5].mxu0 }
 0xc28   :  { %1378 = vtanh.f32 %v679_v46  ;;  %v1104_v49 = vmul.f32 -1.442695, %v679_v46 }
 0xc2a   :  { %1380 = vpow2.f32 %v1104_v49 }
 0xc32   :  { %v1379_v48 = vpop.eup %1378 }
 0xc33   :  { %692 = vrot.lane.b32.xlu0 %v1379_v48, %s1558_s12 }
 0xc34   :  { %v1381_v50 = vpop.eup %1380 }
 0xc35   :  { %v683_v51 = vadd.f32 1.0, %v1381_v50 }
 0xc37   :  { %1382 = vrcp.f32 %v683_v51 }
 0xc41   :  { %v1383_v52 = vpop.eup %1382 }
 0xc42   :  { %v690_v56 = vmul.f32 %v1383_v52, %v688_v55 }
 0xca5   :  { %v693_v53 = vpop.permute.xlu0 %692 }
 0xca6   :  { %v695_v54 = vmul.f32 %v1383_v52, %v693_v53 }
 0xca8   :  { %697 = vrot.lane.b32.xlu1 %v695_v54, %s1559_s3 }
 0xd1a   :  { %v698_v57 = vpop.permute.xlu1 %697 }
 0xd1b   :  { %v700_v58 = vadd.f32 %v698_v57, %v690_v56 }
 0xd1d   :  { %1384 = vtanh.f32 %v700_v58 }
 0xd27   :  { %v1385_v59 = vpop.eup %1384 }
 0xd28   :  { %703 = vrot.lane.b32.xlu0 %v1385_v59, %s1558_s12 }
 0xd9a   :  { %v704_v60 = vpop.permute.xlu0 %703 }
 0xd9b   :  { %v706_v62 = vmul.f32 %v1383_v52, %v704_v60 }
 0xd9d   :  { %708 = vrot.lane.b32.xlu1 %v706_v62, %s1559_s3 }
 0xe0f   :  { %v709_v63 = vpop.permute.xlu1 %708 }
 0xe10   :  { %711 = vst.msk [vmem:[#allocation8 + $0x8] sm:$0x3] %vm269_vm2, %v709_v63  ;;  %1244 = vmatmul.mubr.msk.f32.vlgmr.msra.gmra.mrb[6].mxu1 %vm166_vm3, %v709_v63 }
 0xe11   :  { %1328 = vmatpush3.bf16.msra.mxu1 %v1654_v12  ;;  %1265 = vmatprep.mubr.msk.f32.mxu1 %vm1556_vm0, %v1557_v1 }
 0xe12   :  { %1329 = vmatprep.subr.bf16.mxu1 %v1555_v0  ;;  %v796_v0 = vrot.slane %v700_v58, 6 }
 0xe15   :  { %1331 = vmatpush3.bf16.msra.mxu1 %v1658_v17 }
 0xee3   :  { %v780_v2 = vpop.f32.mrb[6].mxu1 }
 0xee4   :  { %v785_v3 = vrot.slane %v780_v2, 6  ;;  %v1245_v4 = vpop.f32.mrb[7].mxu1 }
 0xee6   :  { %v787_v5 = vadd.f32 %v785_v3, %v1681_v26 }
 0xee8   :  { %1386 = vtanh.f32 %v787_v5  ;;  %v1106_v7 = vmul.f32 -1.442695, %v787_v5 }
 0xeea   :  { %1388 = vpow2.f32 %v1106_v7 }
 0xef2   :  { %v1387_v6 = vpop.eup %1386 }
 0xef3   :  { %800 = vrot.lane.b32.xlu0 %v1387_v6, %s1558_s12 }
 0xef4   :  { %v1389_v8 = vpop.eup %1388 }
 0xef5   :  { %v791_v12 = vadd.f32 1.0, %v1389_v8 }
 0xef7   :  { %1390 = vrcp.f32 %v791_v12 }
 0xf01   :  { %v1391_v9 = vpop.eup %1390 }
 0xf02   :  { %v798_v17 = vmul.f32 %v1391_v9, %v796_v0 }
 0xf65   :  { %v801_v1 = vpop.permute.xlu0 %800 }
 0xf66   :  { %v803_v10 = vmul.f32 %v1391_v9, %v801_v1 }
 0xf68   :  { %805 = vrot.lane.b32.xlu1 %v803_v10, %s1559_s3 }
 0xfda   :  { %v806_v11 = vpop.permute.xlu1 %805 }
 0xfdb   :  { %v808_v13 = vadd.f32 %v806_v11, %v798_v17 }
 0xfdd   :  { %1392 = vtanh.f32 %v808_v13  ;;  %v907_v34 = vrot.slane %v808_v13, 6 }
 0xfe7   :  { %v1393_v14 = vpop.eup %1392 }
 0xfe8   :  { %811 = vrot.lane.b32.xlu0 %v1393_v14, %s1558_s12 }
0x105a   :  { %v812_v15 = vpop.permute.xlu0 %811 }
0x105b   :  { %v814_v16 = vmul.f32 %v1391_v9, %v812_v15 }
0x105d   :  { %v820_v18 = vrot.slane %v814_v16, 2 }
0x105f   :  { %821 = vrot.lane.b32.xlu1 %v820_v18, %s1559_s3 }
0x10d1   :  { %v822_v19 = vpop.permute.xlu1 %821 }
0x10d2   :  { %1255 = vmatmul.mubr.msk.f32.vlgmr.msra.gmra.mrb[6].mxu0 %vm166_vm3, %v822_v19 }
0x11a5   :  { %v891_v20 = vpop.f32.mrb[6].mxu0 }
0x11a6   :  { %v896_v22 = vrot.slane %v891_v20, 4  ;;  %v1256_v23 = vpop.f32.mrb[7].mxu0 }
0x11a8   :  { %v898_v24 = vadd.f32 %v896_v22, %v1681_v26 }
0x11aa   :  { %1394 = vtanh.f32 %v898_v24  ;;  %v1108_v27 = vmul.f32 -1.442695, %v898_v24 }
0x11ac   :  { %1396 = vpow2.f32 %v1108_v27 }
0x11b4   :  { %v1395_v25 = vpop.eup %1394 }
0x11b5   :  { %911 = vrot.lane.b32.xlu0 %v1395_v25, %s1558_s12 }
0x11b6   :  { %v1397_v29 = vpop.eup %1396 }
0x11b7   :  { %v902_v30 = vadd.f32 1.0, %v1397_v29 }
0x11b9   :  { %1398 = vrcp.f32 %v902_v30 }
0x11c3   :  { %v1399_v31 = vpop.eup %1398 }
0x11c4   :  { %v909_v35 = vmul.f32 %v1399_v31, %v907_v34 }
0x1227   :  { %v912_v32 = vpop.permute.xlu0 %911 }
0x1228   :  { %v914_v33 = vmul.f32 %v1399_v31, %v912_v32 }
0x122a   :  { %916 = vrot.lane.b32.xlu1 %v914_v33, %s1559_s3 }
0x129c   :  { %v917_v36 = vpop.permute.xlu1 %916 }
0x129d   :  { %v919_v37 = vadd.f32 %v917_v36, %v909_v35 }
0x129f   :  { %1400 = vtanh.f32 %v919_v37 }
0x12a9   :  { %v1401_v38 = vpop.eup %1400 }
0x12aa   :  { %922 = vrot.lane.b32.xlu0 %v1401_v38, %s1558_s12 }
0x131c   :  { %v923_v39 = vpop.permute.xlu0 %922 }
0x131d   :  { %v925_v40 = vmul.f32 %v1399_v31, %v923_v39 }
0x131f   :  { %v931_v28 = vrot.slane %v925_v40, 4 }
0x1321   :  { %932 = vrot.lane.b32.xlu1 %v931_v28, %s1559_s3 }
0x1393   :  { %v933_v41 = vpop.permute.xlu1 %932 }
0x1394   :  { %1266 = vmatmul.mubr.msk.f32.vlgmr.msra.gmra.mrb[8].mxu1 %vm166_vm3, %v933_v41 }
0x1467   :  { %v1002_v43 = vpop.f32.mrb[8].mxu1 }
0x1468   :  { %v1007_v44 = vrot.slane %v1002_v43, 2  ;;  %v1267_v45 = vpop.f32.mrb[9].mxu1 }
0x146a   :  { %v1009_v46 = vadd.f32 %v1007_v44, %v1681_v26  ;;  %v1018_v26 = vrot.slane %v919_v37, 6 }
0x146c   :  { %1402 = vtanh.f32 %v1009_v46  ;;  %v1110_v48 = vmul.f32 -1.442695, %v1009_v46 }
0x146e   :  { %1404 = vpow2.f32 %v1110_v48 }
0x1476   :  { %v1403_v47 = vpop.eup %1402 }
0x1477   :  { %1022 = vrot.lane.b32.xlu0 %v1403_v47, %s1558_s12 }
0x1478   :  { %v1405_v49 = vpop.eup %1404 }
0x1479   :  { %v1013_v50 = vadd.f32 1.0, %v1405_v49 }
0x147b   :  { %1406 = vrcp.f32 %v1013_v50 }
0x1485   :  { %v1407_v51 = vpop.eup %1406 }
0x1486   :  { %v1020_v54 = vmul.f32 %v1407_v51, %v1018_v26 }
0x14e9   :  { %v1023_v52 = vpop.permute.xlu0 %1022 }
0x14ea   :  { %v1025_v53 = vmul.f32 %v1407_v51, %v1023_v52 }
0x14ec   :  { %1027 = vrot.lane.b32.xlu1 %v1025_v53, %s1559_s3 }
0x14f0   :  { %487 = vrot.lane.b32.xlu1 %v1717_v21, %s1559_s3 }
0x14f4   :  { %816 = vrot.lane.b32.xlu1 %v814_v16, %s1559_s3 }
0x155e   :  { %v1028_v55 = vpop.permute.xlu1 %1027 }
0x155f   :  { %v1030_v56 = vadd.f32 %v1028_v55, %v1020_v54 }
0x1561   :  { %1408 = vtanh.f32 %v1030_v56 }
0x1562   :  { %v488_v57 = vpop.permute.xlu1 %487 }
0x1563   :  { %491 = vst.msk [vmem:[#allocation8] sm:$0x30] %vm490_vm4, %v488_v57 }
0x1566   :  { %v817_v58 = vpop.permute.xlu1 %816 }
0x1567   :  { %819 = vst.msk [vmem:[#allocation8 + $0x8] sm:$0xc] %vm378_vm5, %v817_v58 }
0x156b   :  { %v1409_v59 = vpop.eup %1408 }
0x156c   :  { %1033 = vrot.lane.b32.xlu0 %v1409_v59, %s1558_s12 }
0x1570   :  { %375 = vrot.lane.b32.xlu0 %v1702_v61, %s1559_s3 }
0x1574   :  { %599 = vrot.lane.b32.xlu0 %v1732_v42, %s1559_s3 }
0x1578   :  { %927 = vrot.lane.b32.xlu0 %v925_v40, %s1559_s3 }
0x15de   :  { %v1034_v21 = vpop.permute.xlu0 %1033 }
0x15df   :  { %v1036_v60 = vmul.f32 %v1407_v51, %v1034_v21 }
0x15e1   :  { %1038 = vrot.lane.b32.xlu1 %v1036_v60, %s1559_s3 }
0x15e2   :  { %v376_v62 = vpop.permute.xlu0 %375 }
0x15e3   :  { %379 = vst.msk [vmem:[#allocation8] sm:$0xc] %vm378_vm5, %v376_v62 }
0x15e5   :  { %1044 = vrot.lane.b32.xlu1 %v1030_v56, %s1560_s13 }
0x15e6   :  { %v600_v63 = vpop.permute.xlu0 %599 }
0x15e7   :  { %603 = vst.msk [vmem:[#allocation8] sm:$0xc0] %vm602_vm6, %v600_v63 }
0x15ea   :  { %v928_v2 = vpop.permute.xlu0 %927 }
0x15eb   :  { %930 = vst.msk [vmem:[#allocation8 + $0x8] sm:$0x30] %vm490_vm4, %v928_v2 }
0x1653   :  { %v1039_v61 = vpop.permute.xlu1 %1038 }
0x1654   :  { %1041 = vst.msk [vmem:[#allocation8 + $0x8] sm:$0xc0] %vm602_vm6, %v1039_v61  ;;  %1042 = vst.msk [vmem:[#allocation9 - $0x6] sm:$0xc0] %vm602_vm6, %v1039_v61 }
0x1655   :  { %1487 = shalt.err (!%p1484_p0)
}
0x1656   :  { %s1488_s22 = scalar_lea.hbm %s1843_s5, 32 }
0x1657   :  { %p1489_p1 = scmp.ne.s32.totalorder %s1843_s5, %s1488_s22  ;;  %p1492_p2 = scmp.lt.u32.totalorder %s1488_s22, %s1843_s5 }
0x1659   :  { %p1494_p3 = pnand %p1492_p2, %p1489_p1 }
0x165b   :  { %1497 = shalt.err (!%p1494_p3)
}
0x165c   :  { %1069 = dma.vmem_to_hbm [thread:$0]  %s1067_s15, 32, %s1843_s5, [#allocation10]  }
0x165d   :  { %s1498_s30 = scalar_lea.vmem %s1782_s17, 256  ;;  %p1503_p5 = scmp.lt.s32.totalorder %s1782_s17, %s1782_s17 }
0x165e   :  { %p1499_p4 = scmp.ne.s32.totalorder %s1782_s17, %s1498_s30  ;;  %p1504_p6 = scmp.lt.s32.totalorder %s1498_s30, %s1498_s30 }
0x1660   :  { %p1505_p7 = por %p1504_p6, %p1503_p5 }
0x1662   :  { %p1506_p8 = pnand %p1505_p7, %p1499_p4 }
0x1664   :  { %1509 = shalt.err (!%p1506_p8)
}
0x1665   :  { %s1510_s0 = scalar_lea.hbm %s1842_s4, 256 }
0x1666   :  { %p1511_p9 = scmp.ne.s32.totalorder %s1842_s4, %s1510_s0  ;;  %p1514_p10 = scmp.lt.u32.totalorder %s1510_s0, %s1842_s4 }
0x1668   :  { %p1516_p11 = pnand %p1514_p10, %p1511_p9 }
0x166a   :  { %1519 = shalt.err (!%p1516_p11)
}
0x166b   :  { %1059 = dma.vmem_to_hbm [thread:$0]  %s1782_s17, 256, %s1842_s4, [#allocation4], %s1552_s9, %s1552_s9, %s1553_s10   ;;  %v1045_v42 = vpop.permute.xlu1 %1044 }
0x166c   :  { %1047 = vst.msk [vmem:[#allocation11 - $0x6] sm:$0xc0] %vm602_vm6, %v1045_v42  ;;  %s1520_s13 = scalar_lea.vmem %s1786_s19, 32  ;;  %p1525_p13 = scmp.lt.s32.totalorder %s1786_s19, %s1786_s19 }
0x166d   :  { %p1521_p12 = scmp.ne.s32.totalorder %s1786_s19, %s1520_s13  ;;  %p1526_p0 = scmp.lt.s32.totalorder %s1520_s13, %s1520_s13 }
0x166f   :  { %p1527_p1 = por %p1526_p0, %p1525_p13 }
0x1671   :  { %p1528_p2 = pnand %p1527_p1, %p1521_p12 }
0x1673   :  { %1531 = shalt.err (!%p1528_p2)
}
0x1674   :  { %s1532_s16 = scalar_lea.hbm %s1844_s6, 32 }
0x1675   :  { %p1533_p3 = scmp.ne.s32.totalorder %s1844_s6, %s1532_s16  ;;  %p1536_p4 = scmp.lt.u32.totalorder %s1532_s16, %s1844_s6 }
0x1677   :  { %p1538_p5 = pnand %p1536_p4, %p1533_p3 }
0x1679   :  { %1541 = shalt.err (!%p1538_p5)
}
0x167a   :  { %1079 = dma.vmem_to_hbm [thread:$0]  %s1786_s19, 32, %s1844_s6, [#allocation10]  }
0x167b   :  { %1546 = dma.done.wait [#allocation4], 256  }
0x167c   :  { %1547 = vsyncadd [#allocation4], 4294967040 }
0x167d   :  { %1548 = dma.done.wait [#allocation10], 64  }
0x167e   :  { %1549 = vsyncadd [#allocation10], 4294967232 }
0x167f   :  { %1089 = vsyncpa [#allocation3], 1 }
0x1680   :  { %1090 = vsyncpa [#allocation6], 1 }
0x1681   :  { %1091 = vsyncpa [#allocation4], 1 }
0x1682   :  { %1092 = vsyncpa [#allocation10], 1 }

</bundles_post_ra>
